<compile_context>
chip_gen: v6e
topology: v6e:2x2x1
jax: 0.10.0
libtpu: 0.0.40
codegen_flags: <defaults>
</compile_context>

<pallas_src>
import math

import jax
import jax.numpy as jnp
from jax.experimental import pallas as pl
from jax.experimental.pallas import tpu as pltpu

COMPUTE_DT = jnp.bfloat16   # MXU operand dtype; f32 accumulation everywhere
LANE = 128
SUBLANE = 8
NODE_TILE = 256             # safe on v5e/v6e/v7x; 512 viable on 128-MiB-VMEM parts
_RESIDENT_VMEM_BUDGET = 16 * 1024 * 1024   # conservative vs v7x's 32 MiB scoped default


def _ru(x, m):
    return ((x + m - 1) // m) * m


def _pad2(x, rows, cols):
    r, c = x.shape
    if r == rows and c == cols:
        return x
    return jnp.pad(x, ((0, rows - r), (0, cols - c)))


def _node_padding(n):
    """Node-dim padding + row/col tile shared by ALL kernels in the forward."""
    if n <= NODE_TILE:
        np_ = _ru(n, SUBLANE)
        return np_, np_
    np_ = _ru(n, NODE_TILE)
    return np_, NODE_TILE


# ---------------------------------------------------------------------------
# Kernel 1: y = x @ W_t + b  (row-tiled, weight resident).
# ---------------------------------------------------------------------------
def _linear_kernel(x_ref, w_ref, b_ref, o_ref):
    acc = jnp.dot(x_ref[...], w_ref[...], preferred_element_type=jnp.float32)
    o_ref[...] = (acc + b_ref[...]).astype(o_ref.dtype)


def linear_pallas(x, w_t, bias=None, out_dtype=jnp.float32):
    n, k = x.shape
    m = w_t.shape[1]
    kp, mp = _ru(k, LANE), _ru(m, LANE)
    np_, tm = _node_padding(n)

    xp = _pad2(x.astype(COMPUTE_DT), np_, kp)
    wp = _pad2(w_t.astype(COMPUTE_DT), kp, mp)
    b = jnp.zeros((m,), jnp.float32) if bias is None else bias.astype(jnp.float32)
    bp = _pad2(b.reshape(1, m), 1, mp)

    out = pl.pallas_call(
        _linear_kernel,
        out_shape=jax.ShapeDtypeStruct((np_, mp), out_dtype),
        grid_spec=pltpu.PrefetchScalarGridSpec(
            num_scalar_prefetch=0,
            grid=(np_ // tm,),
            in_specs=[
                pl.BlockSpec((tm, kp), lambda i: (i, 0)),   # x row tile
                pl.BlockSpec((kp, mp), lambda i: (0, 0)),   # weight resident
                pl.BlockSpec((1, mp), lambda i: (0, 0)),    # bias
            ],
            out_specs=pl.BlockSpec((tm, mp), lambda i: (i, 0)),
        ),
        compiler_params=pltpu.CompilerParams(
            dimension_semantics=("parallel",)),
    )(xp, wp, bp)
    return out[:n, :m]


# ---------------------------------------------------------------------------
# Kernel 2: GCN aggregation  out = PReLU(adj @ seq_fts + bias)
#   * resident path: seq_fts fully VMEM-resident, 1-D row grid
#   * tiled fallback: (row, reduction) grid + f32 accumulator scratch
# The adjacency comes in ALREADY padded/cast to bf16 (np_, np_).
# ---------------------------------------------------------------------------
def _gcn_agg_resident_kernel(adj_ref, sf_ref, b_ref, s_ref, o_ref):
    acc = jnp.dot(adj_ref[...], sf_ref[...], preferred_element_type=jnp.float32)
    out = acc + b_ref[...]
    o_ref[...] = jnp.where(out > 0.0, out, s_ref[...] * out).astype(o_ref.dtype)


def _gcn_agg_tiled_kernel(adj_ref, sf_ref, b_ref, s_ref, o_ref, acc_ref):
    kk = pl.program_id(1)

    @pl.when(kk == 0)
    def _():
        acc_ref[...] = jnp.zeros_like(acc_ref)

    acc_ref[...] += jnp.dot(adj_ref[...], sf_ref[...],
                            preferred_element_type=jnp.float32)

    @pl.when(kk == pl.num_programs(1) - 1)
    def _():
        out = acc_ref[...] + b_ref[...]
        o_ref[...] = jnp.where(out > 0.0, out, s_ref[...] * out).astype(o_ref.dtype)


def gcn_aggregate_pallas(adj_padded, n, np_, tile, seq_fts, bias, slope,
                         out_dtype=jnp.float32):
    """PReLU(adj @ seq_fts + bias) for a (possibly head/layer-batched) seq_fts."""
    m = seq_fts.shape[1]
    mp = _ru(m, LANE)
    sfp = _pad2(seq_fts.astype(COMPUTE_DT), np_, mp)
    bp = _pad2(bias.astype(jnp.float32).reshape(1, m), 1, mp)
    sp = _pad2(slope.astype(jnp.float32).reshape(1, m), 1, mp)

    out_bytes = jnp.dtype(out_dtype).itemsize
    vmem_est = (2 * np_ * mp * 2            # resident seq_fts (bf16, worst-case x2)
                + 2 * tile * np_ * 2        # double-buffered adj row tile (bf16)
                + 2 * tile * mp * out_bytes # double-buffered output tile
                + 4 * tile * mp * 4)        # f32 intermediates headroom
    if vmem_est <= _RESIDENT_VMEM_BUDGET:
        out = pl.pallas_call(
            _gcn_agg_resident_kernel,
            out_shape=jax.ShapeDtypeStruct((np_, mp), out_dtype),
            grid_spec=pltpu.PrefetchScalarGridSpec(
                num_scalar_prefetch=0,
                grid=(np_ // tile,),
                in_specs=[
                    pl.BlockSpec((tile, np_), lambda i: (i, 0)),  # adj row tile
                    pl.BlockSpec((np_, mp), lambda i: (0, 0)),    # seq_fts resident
                    pl.BlockSpec((1, mp), lambda i: (0, 0)),      # bias
                    pl.BlockSpec((1, mp), lambda i: (0, 0)),      # PReLU slope
                ],
                out_specs=pl.BlockSpec((tile, mp), lambda i: (i, 0)),
            ),
            compiler_params=pltpu.CompilerParams(
                dimension_semantics=("parallel",)),
        )(adj_padded, sfp, bp, sp)
    else:
        out = pl.pallas_call(
            _gcn_agg_tiled_kernel,
            out_shape=jax.ShapeDtypeStruct((np_, mp), out_dtype),
            grid_spec=pltpu.PrefetchScalarGridSpec(
                num_scalar_prefetch=0,
                grid=(np_ // tile, np_ // tile),
                in_specs=[
                    pl.BlockSpec((tile, tile), lambda i, kk: (i, kk)),
                    pl.BlockSpec((tile, mp), lambda i, kk: (kk, 0)),
                    pl.BlockSpec((1, mp), lambda i, kk: (0, 0)),
                    pl.BlockSpec((1, mp), lambda i, kk: (0, 0)),
                ],
                out_specs=pl.BlockSpec((tile, mp), lambda i, kk: (i, 0)),
                scratch_shapes=[pltpu.VMEM((tile, mp), jnp.float32)],
            ),
            compiler_params=pltpu.CompilerParams(
                dimension_semantics=("parallel", "arbitrary")),
        )(adj_padded, sfp, bp, sp)
    return out[:n, :m]


# ---------------------------------------------------------------------------
# Kernel 3: derivative adjacency  A = softmax((F Wq)(F Wk)^T / sqrt(d)) * adj
# Row-tiled over query blocks; K fed pre-transposed (kp, np_) and resident.
# Returns the PADDED bf16 (np_, np_) matrix (kept padded for all consumers).
# ---------------------------------------------------------------------------
def _make_attention_kernel(n_valid, scale):
    def kernel(q_ref, kt_ref, adj_ref, o_ref):
        s = jnp.dot(q_ref[...], kt_ref[...],
                    preferred_element_type=jnp.float32) * scale
        # Mask padded node columns so they don't pollute the softmax denom.
        col = jax.lax.broadcasted_iota(jnp.int32, s.shape, 1)
        s = jnp.where(col < n_valid, s, -jnp.inf)
        mx = jnp.max(s, axis=1, keepdims=True)
        e = jnp.exp(s - mx)
        denom = jnp.sum(e, axis=1, keepdims=True)
        soft = e * pl.reciprocal(denom, approx=True)
        o_ref[...] = (soft * adj_ref[...].astype(jnp.float32)).astype(o_ref.dtype)
    return kernel


def attention_adjacency_pallas(features, wq_t, wk_t, adj_padded, n, np_, tile):
    fin = features.shape[1]
    kp = _ru(fin, LANE)
    fp = _pad2(features.astype(COMPUTE_DT), np_, kp)
    wqp = _pad2(wq_t.astype(COMPUTE_DT), kp, kp)
    wkp = _pad2(wk_t.astype(COMPUTE_DT), kp, kp)

    # Q / K projections (row-tiled linear kernels); K then transposed to
    # (kp, np_) outside the kernel (tiny n x fin pass) so the score matmul is
    # a plain NT MXU op with no in-kernel XLU transpose.
    qproj = linear_pallas(fp, wqp, None, out_dtype=COMPUTE_DT)   # (np_, kp)
    kproj = linear_pallas(fp, wkp, None, out_dtype=COMPUTE_DT)   # (np_, kp)
    k_t = jnp.swapaxes(kproj, 0, 1)                              # (kp, np_)

    scale = 1.0 / math.sqrt(float(fin))
    out = pl.pallas_call(
        _make_attention_kernel(n, scale),
        out_shape=jax.ShapeDtypeStruct((np_, np_), COMPUTE_DT),
        grid_spec=pltpu.PrefetchScalarGridSpec(
            num_scalar_prefetch=0,
            grid=(np_ // tile,),
            in_specs=[
                pl.BlockSpec((tile, kp), lambda i: (i, 0)),     # Q row tile
                pl.BlockSpec((kp, np_), lambda i: (0, 0)),      # K^T resident
                pl.BlockSpec((tile, np_), lambda i: (i, 0)),    # adj row tile
            ],
            out_specs=pl.BlockSpec((tile, np_), lambda i: (i, 0)),
        ),
        compiler_params=pltpu.CompilerParams(
            dimension_semantics=("parallel",)),
    )(qproj, k_t, adj_padded)
    return out     # padded (np_, np_) bf16; stays padded end-to-end


# ---------------------------------------------------------------------------
# Kernel 4: cluster soft assignment
#   q = normalize( (1 + ||f - c||^2 / alpha)^{-(alpha+1)/2} )
# using ||f-c||^2 = ||f||^2 + ||c||^2 - 2 f@c^T on the MXU; one lane-dense
# (tm, kcp) store; cluster columns beyond kc masked out of the normalization.
# ---------------------------------------------------------------------------
def _make_cluster_q_kernel(n_clusters, alpha):
    power = (alpha + 1.0) / 2.0

    def kernel(f_ref, ct_ref, cn_ref, o_ref):
        f = f_ref[...]                                              # (tm, hp) f32
        fc = jnp.dot(f, ct_ref[...], preferred_element_type=jnp.float32)
        f2 = jnp.sum(f * f, axis=1, keepdims=True)
        d2 = jnp.maximum(f2 + cn_ref[...] - 2.0 * fc, 0.0)
        qv = 1.0 / (1.0 + d2 / alpha)
        qv = jnp.exp(power * jnp.log(qv))                           # qv ** power
        col = jax.lax.broadcasted_iota(jnp.int32, qv.shape, 1)
        qv = jnp.where(col < n_clusters, qv, 0.0)
        o_ref[...] = qv / jnp.sum(qv, axis=1, keepdims=True)
    return kernel


def cluster_q_pallas(feats, clusters, alpha):
    n, h = feats.shape
    kc = clusters.shape[0]
    hp, kcp = _ru(h, LANE), _ru(kc, LANE)
    np_, tm = _node_padding(n)

    fp = _pad2(feats.astype(jnp.float32), np_, hp)
    ctp = _pad2(clusters.astype(jnp.float32).T, hp, kcp)            # (hp, kcp)
    cn = jnp.sum(clusters.astype(jnp.float32) ** 2, axis=1)         # ||c_j||^2
    cnp = _pad2(cn.reshape(1, kc), 1, kcp)

    out = pl.pallas_call(
        _make_cluster_q_kernel(kc, float(alpha)),
        out_shape=jax.ShapeDtypeStruct((np_, kcp), jnp.float32),
        grid_spec=pltpu.PrefetchScalarGridSpec(
            num_scalar_prefetch=0,
            grid=(np_ // tm,),
            in_specs=[
                pl.BlockSpec((tm, hp), lambda i: (i, 0)),
                pl.BlockSpec((hp, kcp), lambda i: (0, 0)),
                pl.BlockSpec((1, kcp), lambda i: (0, 0)),
            ],
            out_specs=pl.BlockSpec((tm, kcp), lambda i: (i, 0)),
        ),
        compiler_params=pltpu.CompilerParams(
            dimension_semantics=("parallel",)),
    )(fp, ctp, cnp)
    return out[:n, :kc]


# ---------------------------------------------------------------------------
# Full LatentRelationExploration.forward
# ---------------------------------------------------------------------------
def latent_relation_exploration_forward(params, features, adj):
    n = features.shape[0]
    np_, tile = _node_padding(n)

    # Pad & cast the adjacency ONCE; keep the (np_, np_) bf16 layout end-to-end.
    adjp = _pad2(adj.astype(COMPUTE_DT), np_, np_)

    # linear_query / linear_key are shared across heads in the torch module, so
    # every A[i] is numerically identical — compute it once (padded) and reuse.
    a_relp = attention_adjacency_pallas(features, params["wq_t"], params["wk_t"],
                                        adjp, n, np_, tile)

    dense = params["dense"]
    n_heads = len(dense)
    n_layers = len(dense[0])
    head_feats = [features for _ in range(n_heads)]

    for layer in range(n_layers):
        sfs, biases, slopes, widths = [], [], [], []
        for hidx in range(n_heads):
            w_t, b, slope = dense[hidx][layer]
            sfs.append(linear_pallas(head_feats[hidx], w_t, None,
                                     out_dtype=COMPUTE_DT))
            biases.append(b.astype(jnp.float32))
            slopes.append(jnp.full((w_t.shape[1],), slope, jnp.float32))
            widths.append(w_t.shape[1])
        # ONE aggregation over the shared a_rel for all heads of this layer.
        agg = gcn_aggregate_pallas(a_relp, n, np_, tile,
                                   jnp.concatenate(sfs, axis=1),
                                   jnp.concatenate(biases),
                                   jnp.concatenate(slopes),
                                   out_dtype=COMPUTE_DT)
        off = 0
        new_feats = []
        for hidx in range(n_heads):
            m_h = widths[hidx]
            h_ml = agg[:, off:off + m_h].astype(jnp.float32)
            off += m_h
            new_feats.append(jnp.concatenate([head_feats[hidx], h_ml], axis=1))
        head_feats = new_feats

    h = linear_pallas(jnp.concatenate(head_feats, axis=1),
                      params["wh_t"], params["bh"])

    # Final two GCNs share adj AND weights: batch into one aggregation.
    wg_t, bg, slope_g = params["gcn"]
    m_g = wg_t.shape[1]
    sf_f = linear_pallas(features, wg_t, None, out_dtype=COMPUTE_DT)
    sf_h = linear_pallas(h, wg_t, None, out_dtype=COMPUTE_DT)
    agg2 = gcn_aggregate_pallas(adjp, n, np_, tile,
                                jnp.concatenate([sf_f, sf_h], axis=1),
                                jnp.concatenate([bg, bg]).astype(jnp.float32),
                                jnp.full((2 * m_g,), slope_g, jnp.float32),
                                out_dtype=jnp.float32)
    feats_gcn = agg2[:, :m_g]
    latent_gcn = agg2[:, m_g:2 * m_g]

    q = cluster_q_pallas(feats_gcn, params["cluster"], params["alpha"])
    return feats_gcn, latent_gcn, q


# ---------------------------------------------------------------------------
# Pure-JAX reference with the SAME mixed-precision policy (bf16 MXU operands,
# f32 accumulation, bf16 rounding of seq_fts / A), unbatched, so it mirrors
# the torch module structure exactly.
# ---------------------------------------------------------------------------
def _ref_linear(x, w_t, bias=None):
    y = jnp.dot(x.astype(COMPUTE_DT), w_t.astype(COMPUTE_DT),
                preferred_element_type=jnp.float32)
    if bias is not None:
        y = y + bias.astype(jnp.float32)[None, :]
    return y


def _ref_gcn(x, adj, w_t, bias, slope):
    sf = _ref_linear(x, w_t).astype(COMPUTE_DT)
    out = jnp.dot(adj.astype(COMPUTE_DT), sf, preferred_element_type=jnp.float32)
    out = out + bias.astype(jnp.float32)[None, :]
    return jnp.where(out > 0.0, out, slope * out)


def _ref_attention(features, wq_t, wk_t, adj):
    scale = 1.0 / math.sqrt(float(features.shape[1]))
    f = features.astype(COMPUTE_DT)
    q = jnp.dot(f, wq_t.astype(COMPUTE_DT), preferred_element_type=jnp.float32)
    k = jnp.dot(f, wk_t.astype(COMPUTE_DT), preferred_element_type=jnp.float32)
    s = jax.lax.dot_general(q.astype(COMPUTE_DT), k.astype(COMPUTE_DT),
                            dimension_numbers=(((1,), (1,)), ((), ())),
                            preferred_element_type=jnp.float32) * scale
    m = jnp.max(s, axis=1, keepdims=True)
    e = jnp.exp(s - m)
    soft = e / jnp.sum(e, axis=1, keepdims=True)
    return (soft * adj.astype(COMPUTE_DT).astype(jnp.float32)).astype(COMPUTE_DT)


def _ref_cluster_q(f, c, alpha):
    d2 = jnp.sum((f[:, None, :] - c[None, :, :]) ** 2, axis=-1)
    q = 1.0 / (1.0 + d2 / alpha)
    q = jnp.exp(((alpha + 1.0) / 2.0) * jnp.log(q))
    return q / jnp.sum(q, axis=1, keepdims=True)


def ref_forward(params, features, adj):
    a_rel = _ref_attention(features, params["wq_t"], params["wk_t"], adj)
    head_outs = []
    for head in params["dense"]:
        v = features
        for (w_t, b, slope) in head:
            h_ml = _ref_gcn(v, a_rel, w_t, b, slope)
            v = jnp.concatenate([v, h_ml], axis=1)
        head_outs.append(v)
    h = _ref_linear(jnp.concatenate(head_outs, axis=1),
                    params["wh_t"], params["bh"])
    wg_t, bg, slope_g = params["gcn"]
    feats_gcn = _ref_gcn(features, adj, wg_t, bg, slope_g)
    latent_gcn = _ref_gcn(h, adj, wg_t, bg, slope_g)
    q = _ref_cluster_q(feats_gcn, params["cluster"], params["alpha"])
    return feats_gcn, latent_gcn, q


def _xavier_linear(key, fan_in, fan_out):
    # torch weight is (out, in); xavier_uniform bound = sqrt(6 / (in + out)).
    bound = math.sqrt(6.0 / (fan_in + fan_out))
    w = jax.random.uniform(key, (fan_out, fan_in), jnp.float32, -bound, bound)
    return w.T                                               # stored as (in, out)


if __name__ == "__main__":
    # Small shapes consistent with the module.
    in_features = 16
    n_hidden_gcn = 32
    n_heads = 2
    n_layers = 2
    n_clusters = 2
    n_nodes = 8

    key = jax.random.PRNGKey(0)
    keys = jax.random.split(key, 16)
    k_it = iter(keys)

    features = jax.random.normal(next(k_it), (n_nodes, in_features), jnp.float32)
    adj = jax.random.uniform(next(k_it), (n_nodes, n_nodes), jnp.float32)

    slice_ft = in_features // n_layers
    dense = []
    for _ in range(n_heads):
        layers = []
        for layer in range(n_layers):
            fin = in_features + layer * slice_ft
            w_t = _xavier_linear(next(k_it), fin, slice_ft)
            b = jnp.zeros((slice_ft,), jnp.float32)          # bias.data.fill_(0.0)
            layers.append((w_t, b, jnp.float32(0.25)))       # PReLU default slope
        dense.append(layers)

    params = {
        "wq_t": _xavier_linear(next(k_it), in_features, in_features),
        "wk_t": _xavier_linear(next(k_it), in_features, in_features),
        "dense": dense,
        "wh_t": _xavier_linear(next(k_it), in_features * 2 * n_heads, in_features),
        "bh": jnp.zeros((in_features,), jnp.float32),
        "gcn": (_xavier_linear(next(k_it), in_features, n_hidden_gcn),
                jnp.zeros((n_hidden_gcn,), jnp.float32),
                jnp.float32(0.25)),
        # torch leaves cluster_layer uninitialized; use a deterministic normal.
        "cluster": jax.random.normal(next(k_it), (n_clusters, n_hidden_gcn),
                                     jnp.float32),
        "alpha": 0.0001,
    }

    fwd = jax.jit(lambda f, a: latent_relation_exploration_forward(params, f, a))
    feats_gcn, latent_gcn, q = fwd(features, adj)
    jax.block_until_ready((feats_gcn, latent_gcn, q))

    ref = ref_forward(params, features, adj)
    assert feats_gcn.shape == (n_nodes, n_hidden_gcn)
    assert latent_gcn.shape == (n_nodes, n_hidden_gcn)
    assert q.shape == (n_nodes, n_clusters)
    for got, want in zip((feats_gcn, latent_gcn, q), ref):
        err = float(jnp.max(jnp.abs(got - want)))
        assert jnp.allclose(got, want, atol=2e-2, rtol=2e-2), err

    print("KERNEL_OK")
</pallas_src>

<mosaic_0001>
module attributes {stable_mosaic.version = 11 : i64} {
  func.func @_linear_kernel(%arg0: i32, %arg1: memref<8x128xbf16, #tpu.memory_space<vmem>>, %arg2: memref<128x128xbf16, #tpu.memory_space<vmem>>, %arg3: memref<1x128xf32, #tpu.memory_space<vmem>>, %arg4: memref<8x128xbf16, #tpu.memory_space<vmem>>) attributes {dimension_semantics = [#tpu.dimension_semantics<parallel>], iteration_bounds = array<i64: 1>, scalar_prefetch = 0 : i64, scratch_operands = 0 : i64, tpu.core_type = #tpu.core_type<tc>, window_params = [{transform_indices = @transform_0, window_bounds = array<i64: 8, 128>}, {pipeline_mode = #tpu.pipeline_mode<synchronous>, transform_indices = @transform_1, window_bounds = array<i64: 128, 128>}, {pipeline_mode = #tpu.pipeline_mode<synchronous>, transform_indices = @transform_2, window_bounds = array<i64: 1, 128>}, {transform_indices = @transform_3, window_bounds = array<i64: 8, 128>}]} {
    %c0 = arith.constant 0 : index
    %c0_0 = arith.constant 0 : index
    %0 = vector.load %arg1[%c0, %c0_0] : memref<8x128xbf16, #tpu.memory_space<vmem>>, vector<8x128xbf16>
    %c0_1 = arith.constant 0 : index
    %c0_2 = arith.constant 0 : index
    %1 = vector.load %arg2[%c0_1, %c0_2] : memref<128x128xbf16, #tpu.memory_space<vmem>>, vector<128x128xbf16>
    %cst = arith.constant dense<0.000000e+00> : vector<8x128xf32>
    %2 = tpu.matmul %0, %1, %cst {dimension_numbers = #tpu.dot_dimension_numbers<[1], [0], [0], [1], [0, 0, 1, 1], [], []>} : vector<8x128xbf16>, vector<128x128xbf16>, vector<8x128xf32> -> vector<8x128xf32>
    %c0_3 = arith.constant 0 : index
    %c0_4 = arith.constant 0 : index
    %3 = vector.load %arg3[%c0_3, %c0_4] : memref<1x128xf32, #tpu.memory_space<vmem>>, vector<1x128xf32>
    %4 = vector.broadcast %3 : vector<1x128xf32> to vector<8x128xf32>
    %5 = arith.addf %2, %4 : vector<8x128xf32>
    %6 = arith.truncf %5 : vector<8x128xf32> to vector<8x128xbf16>
    %c0_5 = arith.constant 0 : index
    %c0_6 = arith.constant 0 : index
    %7 = vector.load %arg4[%c0_5, %c0_6] : memref<8x128xbf16, #tpu.memory_space<vmem>>, vector<8x128xbf16>
    tpu.vector_store %arg4[%c0_5, %c0_6], %6 {strides = array<i32>} : memref<8x128xbf16, #tpu.memory_space<vmem>>, vector<8x128xbf16>,
    return
  }
  func.func @transform_0(%arg0: i32) -> (i32, i32) {
    %c0_i32 = arith.constant 0 : i32
    %c0_i32_0 = arith.constant 0 : i32
    return %arg0, %c0_i32 : i32, i32
  }
  func.func @transform_1(%arg0: i32) -> (i32, i32) {
    %c0_i32 = arith.constant 0 : i32
    %c0_i32_0 = arith.constant 0 : i32
    %c0_i32_1 = arith.constant 0 : i32
    return %c0_i32, %c0_i32_0 : i32, i32
  }
  func.func @transform_2(%arg0: i32) -> (i32, i32) {
    %c0_i32 = arith.constant 0 : i32
    %c0_i32_0 = arith.constant 0 : i32
    %c0_i32_1 = arith.constant 0 : i32
    return %c0_i32, %c0_i32_0 : i32, i32
  }
  func.func @transform_3(%arg0: i32) -> (i32, i32) {
    %c0_i32 = arith.constant 0 : i32
    %c0_i32_0 = arith.constant 0 : i32
    return %arg0, %c0_i32 : i32, i32
  }
}

module attributes {stable_mosaic.version = 11 : i64} {
  func.func @_linear_kernel(%arg0: i32, %arg1: memref<8x128xbf16, #tpu.memory_space<vmem>>, %arg2: memref<128x128xbf16, #tpu.memory_space<vmem>>, %arg3: memref<1x128xf32, #tpu.memory_space<vmem>>, %arg4: memref<8x128xbf16, #tpu.memory_space<vmem>>) attributes {dimension_semantics = [#tpu.dimension_semantics<parallel>], iteration_bounds = array<i64: 1>, scalar_prefetch = 0 : i64, scratch_operands = 0 : i64, tpu.core_type = #tpu.core_type<tc>, window_params = [{transform_indices = @transform_0, window_bounds = array<i64: 8, 128>}, {pipeline_mode = #tpu.pipeline_mode<synchronous>, transform_indices = @transform_1, window_bounds = array<i64: 128, 128>}, {pipeline_mode = #tpu.pipeline_mode<synchronous>, transform_indices = @transform_2, window_bounds = array<i64: 1, 128>}, {transform_indices = @transform_3, window_bounds = array<i64: 8, 128>}]} {
    %c0 = arith.constant 0 : index
    %c0_0 = arith.constant 0 : index
    %0 = vector.load %arg1[%c0, %c0_0] : memref<8x128xbf16, #tpu.memory_space<vmem>>, vector<8x128xbf16>
    %c0_1 = arith.constant 0 : index
    %c0_2 = arith.constant 0 : index
    %1 = vector.load %arg2[%c0_1, %c0_2] : memref<128x128xbf16, #tpu.memory_space<vmem>>, vector<128x128xbf16>
    %cst = arith.constant dense<0.000000e+00> : vector<8x128xf32>
    %2 = tpu.matmul %0, %1, %cst {dimension_numbers = #tpu.dot_dimension_numbers<[1], [0], [0], [1], [0, 0, 1, 1], [], []>} : vector<8x128xbf16>, vector<128x128xbf16>, vector<8x128xf32> -> vector<8x128xf32>
    %c0_3 = arith.constant 0 : index
    %c0_4 = arith.constant 0 : index
    %3 = vector.load %arg3[%c0_3, %c0_4] : memref<1x128xf32, #tpu.memory_space<vmem>>, vector<1x128xf32>
    %4 = vector.broadcast %3 : vector<1x128xf32> to vector<8x128xf32>
    %5 = arith.addf %2, %4 : vector<8x128xf32>
    %6 = arith.truncf %5 : vector<8x128xf32> to vector<8x128xbf16>
    %c0_5 = arith.constant 0 : index
    %c0_6 = arith.constant 0 : index
    %7 = vector.load %arg4[%c0_5, %c0_6] : memref<8x128xbf16, #tpu.memory_space<vmem>>, vector<8x128xbf16>
    tpu.vector_store %arg4[%c0_5, %c0_6], %6 {strides = array<i32>} : memref<8x128xbf16, #tpu.memory_space<vmem>>, vector<8x128xbf16>,
    return
  }
  func.func @transform_0(%arg0: i32) -> (i32, i32) {
    %c0_i32 = arith.constant 0 : i32
    %c0_i32_0 = arith.constant 0 : i32
    return %arg0, %c0_i32 : i32, i32
  }
  func.func @transform_1(%arg0: i32) -> (i32, i32) {
    %c0_i32 = arith.constant 0 : i32
    %c0_i32_0 = arith.constant 0 : i32
    %c0_i32_1 = arith.constant 0 : i32
    return %c0_i32, %c0_i32_0 : i32, i32
  }
  func.func @transform_2(%arg0: i32) -> (i32, i32) {
    %c0_i32 = arith.constant 0 : i32
    %c0_i32_0 = arith.constant 0 : i32
    %c0_i32_1 = arith.constant 0 : i32
    return %c0_i32, %c0_i32_0 : i32, i32
  }
  func.func @transform_3(%arg0: i32) -> (i32, i32) {
    %c0_i32 = arith.constant 0 : i32
    %c0_i32_0 = arith.constant 0 : i32
    return %arg0, %c0_i32 : i32, i32
  }
}

module attributes {stable_mosaic.version = 11 : i64} {
  func.func @kernel(%arg0: i32, %arg1: memref<8x128xbf16, #tpu.memory_space<vmem>>, %arg2: memref<128x8xbf16, #tpu.memory_space<vmem>>, %arg3: memref<8x8xbf16, #tpu.memory_space<vmem>>, %arg4: memref<8x8xbf16, #tpu.memory_space<vmem>>) attributes {dimension_semantics = [#tpu.dimension_semantics<parallel>], iteration_bounds = array<i64: 1>, scalar_prefetch = 0 : i64, scratch_operands = 0 : i64, tpu.core_type = #tpu.core_type<tc>, window_params = [{transform_indices = @transform_0, window_bounds = array<i64: 8, 128>}, {pipeline_mode = #tpu.pipeline_mode<synchronous>, transform_indices = @transform_1, window_bounds = array<i64: 128, 8>}, {transform_indices = @transform_2, window_bounds = array<i64: 8, 8>}, {transform_indices = @transform_3, window_bounds = array<i64: 8, 8>}]} {
    %c0 = arith.constant 0 : index
    %c0_0 = arith.constant 0 : index
    %0 = vector.load %arg1[%c0, %c0_0] : memref<8x128xbf16, #tpu.memory_space<vmem>>, vector<8x128xbf16>
    %c0_1 = arith.constant 0 : index
    %c0_2 = arith.constant 0 : index
    %1 = vector.load %arg2[%c0_1, %c0_2] : memref<128x8xbf16, #tpu.memory_space<vmem>>, vector<128x8xbf16>
    %cst = arith.constant dense<0.000000e+00> : vector<8x8xf32>
    %2 = tpu.matmul %0, %1, %cst {dimension_numbers = #tpu.dot_dimension_numbers<[1], [0], [0], [1], [0, 0, 1, 1], [], []>} : vector<8x128xbf16>, vector<128x8xbf16>, vector<8x8xf32> -> vector<8x8xf32>
    %cst_3 = arith.constant 2.500000e-01 : f32
    %3 = vector.broadcast %cst_3 : f32 to vector<8x8xf32>
    %4 = arith.mulf %2, %3 : vector<8x8xf32>
    %5 = tpu.iota {dimensions = array<i32: 1>} : vector<8x8xi32>
    %c8_i32 = arith.constant 8 : i32
    %6 = vector.broadcast %c8_i32 : i32 to vector<8x8xi32>
    %7 = arith.cmpi slt, %5, %6 : vector<8x8xi32>
    %cst_4 = arith.constant 0xFF800000 : f32
    %8 = vector.broadcast %cst_4 : f32 to vector<8x8xf32>
    %9 = arith.select %7, %4, %8 : vector<8x8xi1>, vector<8x8xf32>
    %cst_5 = arith.constant dense<0xFF800000> : vector<8xf32>
    %10 = vector.multi_reduction <maximumf>, %9, %cst_5 [1] : vector<8x8xf32> to vector<8xf32>
    %11 = vector.shape_cast %10 : vector<8xf32> to vector<8x1xf32>
    %12 = vector.broadcast %11 : vector<8x1xf32> to vector<8x8xf32>
    %13 = arith.subf %9, %12 : vector<8x8xf32>
    %14 = math.exp %13 : vector<8x8xf32>
    %cst_6 = arith.constant dense<0.000000e+00> : vector<8xf32>
    %15 = vector.multi_reduction <add>, %14, %cst_6 [1] : vector<8x8xf32> to vector<8xf32>
    %16 = vector.shape_cast %15 : vector<8xf32> to vector<8x1xf32>
    %17 = tpu.reciprocal %16 {approx = true} : vector<8x1xf32> -> vector<8x1xf32>
    %18 = vector.broadcast %17 : vector<8x1xf32> to vector<8x8xf32>
    %19 = arith.mulf %14, %18 : vector<8x8xf32>
    %c0_7 = arith.constant 0 : index
    %c0_8 = arith.constant 0 : index
    %20 = vector.load %arg3[%c0_7, %c0_8] : memref<8x8xbf16, #tpu.memory_space<vmem>>, vector<8x8xbf16>
    %21 = arith.extf %20 : vector<8x8xbf16> to vector<8x8xf32>
    %22 = arith.mulf %19, %21 : vector<8x8xf32>
    %23 = arith.truncf %22 : vector<8x8xf32> to vector<8x8xbf16>
    %c0_9 = arith.constant 0 : index
    %c0_10 = arith.constant 0 : index
    %24 = vector.load %arg4[%c0_9, %c0_10] : memref<8x8xbf16, #tpu.memory_space<vmem>>, vector<8x8xbf16>
    tpu.vector_store %arg4[%c0_9, %c0_10], %23 {strides = array<i32>} : memref<8x8xbf16, #tpu.memory_space<vmem>>, vector<8x8xbf16>,
    return
  }
  func.func @transform_0(%arg0: i32) -> (i32, i32) {
    %c0_i32 = arith.constant 0 : i32
    %c0_i32_0 = arith.constant 0 : i32
    return %arg0, %c0_i32 : i32, i32
  }
  func.func @transform_1(%arg0: i32) -> (i32, i32) {
    %c0_i32 = arith.constant 0 : i32
    %c0_i32_0 = arith.constant 0 : i32
    %c0_i32_1 = arith.constant 0 : i32
    return %c0_i32, %c0_i32_0 : i32, i32
  }
  func.func @transform_2(%arg0: i32) -> (i32, i32) {
    %c0_i32 = arith.constant 0 : i32
    %c0_i32_0 = arith.constant 0 : i32
    return %arg0, %c0_i32 : i32, i32
  }
  func.func @transform_3(%arg0: i32) -> (i32, i32) {
    %c0_i32 = arith.constant 0 : i32
    %c0_i32_0 = arith.constant 0 : i32
    return %arg0, %c0_i32 : i32, i32
  }
}

module attributes {stable_mosaic.version = 11 : i64} {
  func.func @_gcn_agg_resident_kernel(%arg0: i32, %arg1: memref<8x8xbf16, #tpu.memory_space<vmem>>, %arg2: memref<8x128xbf16, #tpu.memory_space<vmem>>, %arg3: memref<1x128xf32, #tpu.memory_space<vmem>>, %arg4: memref<1x128xf32, #tpu.memory_space<vmem>>, %arg5: memref<8x128xbf16, #tpu.memory_space<vmem>>) attributes {dimension_semantics = [#tpu.dimension_semantics<parallel>], iteration_bounds = array<i64: 1>, scalar_prefetch = 0 : i64, scratch_operands = 0 : i64, tpu.core_type = #tpu.core_type<tc>, window_params = [{transform_indices = @transform_0, window_bounds = array<i64: 8, 8>}, {pipeline_mode = #tpu.pipeline_mode<synchronous>, transform_indices = @transform_1, window_bounds = array<i64: 8, 128>}, {pipeline_mode = #tpu.pipeline_mode<synchronous>, transform_indices = @transform_2, window_bounds = array<i64: 1, 128>}, {pipeline_mode = #tpu.pipeline_mode<synchronous>, transform_indices = @transform_3, window_bounds = array<i64: 1, 128>}, {transform_indices = @transform_4, window_bounds = array<i64: 8, 128>}]} {
    %c0 = arith.constant 0 : index
    %c0_0 = arith.constant 0 : index
    %0 = vector.load %arg1[%c0, %c0_0] : memref<8x8xbf16, #tpu.memory_space<vmem>>, vector<8x8xbf16>
    %c0_1 = arith.constant 0 : index
    %c0_2 = arith.constant 0 : index
    %1 = vector.load %arg2[%c0_1, %c0_2] : memref<8x128xbf16, #tpu.memory_space<vmem>>, vector<8x128xbf16>
    %cst = arith.constant dense<0.000000e+00> : vector<8x128xf32>
    %2 = tpu.matmul %0, %1, %cst {dimension_numbers = #tpu.dot_dimension_numbers<[1], [0], [0], [1], [0, 0, 1, 1], [], []>} : vector<8x8xbf16>, vector<8x128xbf16>, vector<8x128xf32> -> vector<8x128xf32>
    %c0_3 = arith.constant 0 : index
    %c0_4 = arith.constant 0 : index
    %3 = vector.load %arg3[%c0_3, %c0_4] : memref<1x128xf32, #tpu.memory_space<vmem>>, vector<1x128xf32>
    %4 = vector.broadcast %3 : vector<1x128xf32> to vector<8x128xf32>
    %5 = arith.addf %2, %4 : vector<8x128xf32>
    %cst_5 = arith.constant 0.000000e+00 : f32
    %6 = vector.broadcast %cst_5 : f32 to vector<8x128xf32>
    %7 = arith.cmpf ogt, %5, %6 : vector<8x128xf32>
    %c0_6 = arith.constant 0 : index
    %c0_7 = arith.constant 0 : index
    %8 = vector.load %arg4[%c0_6, %c0_7] : memref<1x128xf32, #tpu.memory_space<vmem>>, vector<1x128xf32>
    %9 = vector.broadcast %8 : vector<1x128xf32> to vector<8x128xf32>
    %10 = arith.mulf %9, %5 : vector<8x128xf32>
    %11 = arith.select %7, %5, %10 : vector<8x128xi1>, vector<8x128xf32>
    %12 = arith.truncf %11 : vector<8x128xf32> to vector<8x128xbf16>
    %c0_8 = arith.constant 0 : index
    %c0_9 = arith.constant 0 : index
    %13 = vector.load %arg5[%c0_8, %c0_9] : memref<8x128xbf16, #tpu.memory_space<vmem>>, vector<8x128xbf16>
    tpu.vector_store %arg5[%c0_8, %c0_9], %12 {strides = array<i32>} : memref<8x128xbf16, #tpu.memory_space<vmem>>, vector<8x128xbf16>,
    return
  }
  func.func @transform_0(%arg0: i32) -> (i32, i32) {
    %c0_i32 = arith.constant 0 : i32
    %c0_i32_0 = arith.constant 0 : i32
    return %arg0, %c0_i32 : i32, i32
  }
  func.func @transform_1(%arg0: i32) -> (i32, i32) {
    %c0_i32 = arith.constant 0 : i32
    %c0_i32_0 = arith.constant 0 : i32
    %c0_i32_1 = arith.constant 0 : i32
    return %c0_i32, %c0_i32_0 : i32, i32
  }
  func.func @transform_2(%arg0: i32) -> (i32, i32) {
    %c0_i32 = arith.constant 0 : i32
    %c0_i32_0 = arith.constant 0 : i32
    %c0_i32_1 = arith.constant 0 : i32
    return %c0_i32, %c0_i32_0 : i32, i32
  }
  func.func @transform_3(%arg0: i32) -> (i32, i32) {
    %c0_i32 = arith.constant 0 : i32
    %c0_i32_0 = arith.constant 0 : i32
    %c0_i32_1 = arith.constant 0 : i32
    return %c0_i32, %c0_i32_0 : i32, i32
  }
  func.func @transform_4(%arg0: i32) -> (i32, i32) {
    %c0_i32 = arith.constant 0 : i32
    %c0_i32_0 = arith.constant 0 : i32
    return %arg0, %c0_i32 : i32, i32
  }
}

module attributes {stable_mosaic.version = 11 : i64} {
  func.func @_linear_kernel(%arg0: i32, %arg1: memref<8x128xbf16, #tpu.memory_space<vmem>>, %arg2: memref<128x128xbf16, #tpu.memory_space<vmem>>, %arg3: memref<1x128xf32, #tpu.memory_space<vmem>>, %arg4: memref<8x128xf32, #tpu.memory_space<vmem>>) attributes {dimension_semantics = [#tpu.dimension_semantics<parallel>], iteration_bounds = array<i64: 1>, scalar_prefetch = 0 : i64, scratch_operands = 0 : i64, tpu.core_type = #tpu.core_type<tc>, window_params = [{transform_indices = @transform_0, window_bounds = array<i64: 8, 128>}, {pipeline_mode = #tpu.pipeline_mode<synchronous>, transform_indices = @transform_1, window_bounds = array<i64: 128, 128>}, {pipeline_mode = #tpu.pipeline_mode<synchronous>, transform_indices = @transform_2, window_bounds = array<i64: 1, 128>}, {transform_indices = @transform_3, window_bounds = array<i64: 8, 128>}]} {
    %c0 = arith.constant 0 : index
    %c0_0 = arith.constant 0 : index
    %0 = vector.load %arg1[%c0, %c0_0] : memref<8x128xbf16, #tpu.memory_space<vmem>>, vector<8x128xbf16>
    %c0_1 = arith.constant 0 : index
    %c0_2 = arith.constant 0 : index
    %1 = vector.load %arg2[%c0_1, %c0_2] : memref<128x128xbf16, #tpu.memory_space<vmem>>, vector<128x128xbf16>
    %cst = arith.constant dense<0.000000e+00> : vector<8x128xf32>
    %2 = tpu.matmul %0, %1, %cst {dimension_numbers = #tpu.dot_dimension_numbers<[1], [0], [0], [1], [0, 0, 1, 1], [], []>} : vector<8x128xbf16>, vector<128x128xbf16>, vector<8x128xf32> -> vector<8x128xf32>
    %c0_3 = arith.constant 0 : index
    %c0_4 = arith.constant 0 : index
    %3 = vector.load %arg3[%c0_3, %c0_4] : memref<1x128xf32, #tpu.memory_space<vmem>>, vector<1x128xf32>
    %4 = vector.broadcast %3 : vector<1x128xf32> to vector<8x128xf32>
    %5 = arith.addf %2, %4 : vector<8x128xf32>
    %c0_5 = arith.constant 0 : index
    %c0_6 = arith.constant 0 : index
    %6 = vector.load %arg4[%c0_5, %c0_6] : memref<8x128xf32, #tpu.memory_space<vmem>>, vector<8x128xf32>
    tpu.vector_store %arg4[%c0_5, %c0_6], %5 {strides = array<i32>} : memref<8x128xf32, #tpu.memory_space<vmem>>, vector<8x128xf32>,
    return
  }
  func.func @transform_0(%arg0: i32) -> (i32, i32) {
    %c0_i32 = arith.constant 0 : i32
    %c0_i32_0 = arith.constant 0 : i32
    return %arg0, %c0_i32 : i32, i32
  }
  func.func @transform_1(%arg0: i32) -> (i32, i32) {
    %c0_i32 = arith.constant 0 : i32
    %c0_i32_0 = arith.constant 0 : i32
    %c0_i32_1 = arith.constant 0 : i32
    return %c0_i32, %c0_i32_0 : i32, i32
  }
  func.func @transform_2(%arg0: i32) -> (i32, i32) {
    %c0_i32 = arith.constant 0 : i32
    %c0_i32_0 = arith.constant 0 : i32
    %c0_i32_1 = arith.constant 0 : i32
    return %c0_i32, %c0_i32_0 : i32, i32
  }
  func.func @transform_3(%arg0: i32) -> (i32, i32) {
    %c0_i32 = arith.constant 0 : i32
    %c0_i32_0 = arith.constant 0 : i32
    return %arg0, %c0_i32 : i32, i32
  }
}

module attributes {stable_mosaic.version = 11 : i64} {
  func.func @_gcn_agg_resident_kernel(%arg0: i32, %arg1: memref<8x8xbf16, #tpu.memory_space<vmem>>, %arg2: memref<8x128xbf16, #tpu.memory_space<vmem>>, %arg3: memref<1x128xf32, #tpu.memory_space<vmem>>, %arg4: memref<1x128xf32, #tpu.memory_space<vmem>>, %arg5: memref<8x128xf32, #tpu.memory_space<vmem>>) attributes {dimension_semantics = [#tpu.dimension_semantics<parallel>], iteration_bounds = array<i64: 1>, scalar_prefetch = 0 : i64, scratch_operands = 0 : i64, tpu.core_type = #tpu.core_type<tc>, window_params = [{transform_indices = @transform_0, window_bounds = array<i64: 8, 8>}, {pipeline_mode = #tpu.pipeline_mode<synchronous>, transform_indices = @transform_1, window_bounds = array<i64: 8, 128>}, {pipeline_mode = #tpu.pipeline_mode<synchronous>, transform_indices = @transform_2, window_bounds = array<i64: 1, 128>}, {pipeline_mode = #tpu.pipeline_mode<synchronous>, transform_indices = @transform_3, window_bounds = array<i64: 1, 128>}, {transform_indices = @transform_4, window_bounds = array<i64: 8, 128>}]} {
    %c0 = arith.constant 0 : index
    %c0_0 = arith.constant 0 : index
    %0 = vector.load %arg1[%c0, %c0_0] : memref<8x8xbf16, #tpu.memory_space<vmem>>, vector<8x8xbf16>
    %c0_1 = arith.constant 0 : index
    %c0_2 = arith.constant 0 : index
    %1 = vector.load %arg2[%c0_1, %c0_2] : memref<8x128xbf16, #tpu.memory_space<vmem>>, vector<8x128xbf16>
    %cst = arith.constant dense<0.000000e+00> : vector<8x128xf32>
    %2 = tpu.matmul %0, %1, %cst {dimension_numbers = #tpu.dot_dimension_numbers<[1], [0], [0], [1], [0, 0, 1, 1], [], []>} : vector<8x8xbf16>, vector<8x128xbf16>, vector<8x128xf32> -> vector<8x128xf32>
    %c0_3 = arith.constant 0 : index
    %c0_4 = arith.constant 0 : index
    %3 = vector.load %arg3[%c0_3, %c0_4] : memref<1x128xf32, #tpu.memory_space<vmem>>, vector<1x128xf32>
    %4 = vector.broadcast %3 : vector<1x128xf32> to vector<8x128xf32>
    %5 = arith.addf %2, %4 : vector<8x128xf32>
    %cst_5 = arith.constant 0.000000e+00 : f32
    %6 = vector.broadcast %cst_5 : f32 to vector<8x128xf32>
    %7 = arith.cmpf ogt, %5, %6 : vector<8x128xf32>
    %c0_6 = arith.constant 0 : index
    %c0_7 = arith.constant 0 : index
    %8 = vector.load %arg4[%c0_6, %c0_7] : memref<1x128xf32, #tpu.memory_space<vmem>>, vector<1x128xf32>
    %9 = vector.broadcast %8 : vector<1x128xf32> to vector<8x128xf32>
    %10 = arith.mulf %9, %5 : vector<8x128xf32>
    %11 = arith.select %7, %5, %10 : vector<8x128xi1>, vector<8x128xf32>
    %c0_8 = arith.constant 0 : index
    %c0_9 = arith.constant 0 : index
    %12 = vector.load %arg5[%c0_8, %c0_9] : memref<8x128xf32, #tpu.memory_space<vmem>>, vector<8x128xf32>
    tpu.vector_store %arg5[%c0_8, %c0_9], %11 {strides = array<i32>} : memref<8x128xf32, #tpu.memory_space<vmem>>, vector<8x128xf32>,
    return
  }
  func.func @transform_0(%arg0: i32) -> (i32, i32) {
    %c0_i32 = arith.constant 0 : i32
    %c0_i32_0 = arith.constant 0 : i32
    return %arg0, %c0_i32 : i32, i32
  }
  func.func @transform_1(%arg0: i32) -> (i32, i32) {
    %c0_i32 = arith.constant 0 : i32
    %c0_i32_0 = arith.constant 0 : i32
    %c0_i32_1 = arith.constant 0 : i32
    return %c0_i32, %c0_i32_0 : i32, i32
  }
  func.func @transform_2(%arg0: i32) -> (i32, i32) {
    %c0_i32 = arith.constant 0 : i32
    %c0_i32_0 = arith.constant 0 : i32
    %c0_i32_1 = arith.constant 0 : i32
    return %c0_i32, %c0_i32_0 : i32, i32
  }
  func.func @transform_3(%arg0: i32) -> (i32, i32) {
    %c0_i32 = arith.constant 0 : i32
    %c0_i32_0 = arith.constant 0 : i32
    %c0_i32_1 = arith.constant 0 : i32
    return %c0_i32, %c0_i32_0 : i32, i32
  }
  func.func @transform_4(%arg0: i32) -> (i32, i32) {
    %c0_i32 = arith.constant 0 : i32
    %c0_i32_0 = arith.constant 0 : i32
    return %arg0, %c0_i32 : i32, i32
  }
}

module attributes {stable_mosaic.version = 11 : i64} {
  func.func @kernel(%arg0: i32, %arg1: memref<8x128xf32, #tpu.memory_space<vmem>>, %arg2: memref<128x128xf32, #tpu.memory_space<vmem>>, %arg3: memref<1x128xf32, #tpu.memory_space<vmem>>, %arg4: memref<8x128xf32, #tpu.memory_space<vmem>>) attributes {dimension_semantics = [#tpu.dimension_semantics<parallel>], iteration_bounds = array<i64: 1>, scalar_prefetch = 0 : i64, scratch_operands = 0 : i64, tpu.core_type = #tpu.core_type<tc>, window_params = [{transform_indices = @transform_0, window_bounds = array<i64: 8, 128>}, {pipeline_mode = #tpu.pipeline_mode<synchronous>, transform_indices = @transform_1, window_bounds = array<i64: 128, 128>}, {pipeline_mode = #tpu.pipeline_mode<synchronous>, transform_indices = @transform_2, window_bounds = array<i64: 1, 128>}, {transform_indices = @transform_3, window_bounds = array<i64: 8, 128>}]} {
    %c0 = arith.constant 0 : index
    %c0_0 = arith.constant 0 : index
    %0 = vector.load %arg1[%c0, %c0_0] : memref<8x128xf32, #tpu.memory_space<vmem>>, vector<8x128xf32>
    %c0_1 = arith.constant 0 : index
    %c0_2 = arith.constant 0 : index
    %1 = vector.load %arg2[%c0_1, %c0_2] : memref<128x128xf32, #tpu.memory_space<vmem>>, vector<128x128xf32>
    %cst = arith.constant dense<0.000000e+00> : vector<8x128xf32>
    %2 = tpu.matmul %0, %1, %cst {dimension_numbers = #tpu.dot_dimension_numbers<[1], [0], [0], [1], [0, 0, 1, 1], [], []>} : vector<8x128xf32>, vector<128x128xf32>, vector<8x128xf32> -> vector<8x128xf32>
    %3 = arith.mulf %0, %0 : vector<8x128xf32>
    %cst_3 = arith.constant dense<0.000000e+00> : vector<8xf32>
    %4 = vector.multi_reduction <add>, %3, %cst_3 [1] : vector<8x128xf32> to vector<8xf32>
    %5 = vector.shape_cast %4 : vector<8xf32> to vector<8x1xf32>
    %c0_4 = arith.constant 0 : index
    %c0_5 = arith.constant 0 : index
    %6 = vector.load %arg3[%c0_4, %c0_5] : memref<1x128xf32, #tpu.memory_space<vmem>>, vector<1x128xf32>
    %7 = vector.broadcast %5 : vector<8x1xf32> to vector<8x128xf32>
    %8 = vector.broadcast %6 : vector<1x128xf32> to vector<8x128xf32>
    %9 = arith.addf %7, %8 : vector<8x128xf32>
    %cst_6 = arith.constant 2.000000e+00 : f32
    %10 = vector.broadcast %cst_6 : f32 to vector<8x128xf32>
    %11 = arith.mulf %10, %2 : vector<8x128xf32>
    %12 = arith.subf %9, %11 : vector<8x128xf32>
    %cst_7 = arith.constant 0.000000e+00 : f32
    %13 = vector.broadcast %cst_7 : f32 to vector<8x128xf32>
    %14 = arith.maximumf %12, %13 : vector<8x128xf32>
    %cst_8 = arith.constant 9.99999974E-5 : f32
    %15 = vector.broadcast %cst_8 : f32 to vector<8x128xf32>
    %16 = arith.divf %14, %15 : vector<8x128xf32>
    %cst_9 = arith.constant 1.000000e+00 : f32
    %17 = vector.broadcast %cst_9 : f32 to vector<8x128xf32>
    %18 = arith.addf %17, %16 : vector<8x128xf32>
    %cst_10 = arith.constant 1.000000e+00 : f32
    %19 = vector.broadcast %cst_10 : f32 to vector<8x128xf32>
    %20 = arith.divf %19, %18 : vector<8x128xf32>
    %21 = math.log %20 : vector<8x128xf32>
    %cst_11 = arith.constant 5.000500e-01 : f32
    %22 = vector.broadcast %cst_11 : f32 to vector<8x128xf32>
    %23 = arith.mulf %22, %21 : vector<8x128xf32>
    %24 = math.exp %23 : vector<8x128xf32>
    %25 = tpu.iota {dimensions = array<i32: 1>} : vector<8x128xi32>
    %c2_i32 = arith.constant 2 : i32
    %26 = vector.broadcast %c2_i32 : i32 to vector<8x128xi32>
    %27 = arith.cmpi slt, %25, %26 : vector<8x128xi32>
    %cst_12 = arith.constant 0.000000e+00 : f32
    %28 = vector.broadcast %cst_12 : f32 to vector<8x128xf32>
    %29 = arith.select %27, %24, %28 : vector<8x128xi1>, vector<8x128xf32>
    %cst_13 = arith.constant dense<0.000000e+00> : vector<8xf32>
    %30 = vector.multi_reduction <add>, %29, %cst_13 [1] : vector<8x128xf32> to vector<8xf32>
    %31 = vector.shape_cast %30 : vector<8xf32> to vector<8x1xf32>
    %32 = vector.broadcast %31 : vector<8x1xf32> to vector<8x128xf32>
    %33 = arith.divf %29, %32 : vector<8x128xf32>
    %c0_14 = arith.constant 0 : index
    %c0_15 = arith.constant 0 : index
    %34 = vector.load %arg4[%c0_14, %c0_15] : memref<8x128xf32, #tpu.memory_space<vmem>>, vector<8x128xf32>
    tpu.vector_store %arg4[%c0_14, %c0_15], %33 {strides = array<i32>} : memref<8x128xf32, #tpu.memory_space<vmem>>, vector<8x128xf32>,
    return
  }
  func.func @transform_0(%arg0: i32) -> (i32, i32) {
    %c0_i32 = arith.constant 0 : i32
    %c0_i32_0 = arith.constant 0 : i32
    return %arg0, %c0_i32 : i32, i32
  }
  func.func @transform_1(%arg0: i32) -> (i32, i32) {
    %c0_i32 = arith.constant 0 : i32
    %c0_i32_0 = arith.constant 0 : i32
    %c0_i32_1 = arith.constant 0 : i32
    return %c0_i32, %c0_i32_0 : i32, i32
  }
  func.func @transform_2(%arg0: i32) -> (i32, i32) {
    %c0_i32 = arith.constant 0 : i32
    %c0_i32_0 = arith.constant 0 : i32
    %c0_i32_1 = arith.constant 0 : i32
    return %c0_i32, %c0_i32_0 : i32, i32
  }
  func.func @transform_3(%arg0: i32) -> (i32, i32) {
    %c0_i32 = arith.constant 0 : i32
    %c0_i32_0 = arith.constant 0 : i32
    return %arg0, %c0_i32 : i32, i32
  }
}

</mosaic_0001>

<bundles_post_ra>
// kernel: _lambda_.19
= control target key start
LH: loop header
LB: loop body
LE: loop exit
PB: predicated region body
PF: predicated region fallthrough
CT: control target
= control target key end

     0   :  { %vm31_vm0 = vcmask 1043456   ;;  %v104_v0 = vmov 0.0   ;;  %vm105_vm1 = vmmov 0   ;;  %vm27_vm2 = vcmask 64512   ;;  %s146_s1 = inlined_call_operand.vmem [shape: bf16[8,128], index: 1, kind: input, shape index: {}]   ;;  %s147_s0 = inlined_call_operand.vmem [shape: bf16[8,8], index: 0, kind: input, shape index: {}]   ;;  %s148_s2 = inlined_call_operand.vmem [shape: f32[1,128], index: 2, kind: input, shape index: {}]   ;;  %s149_s3 = inlined_call_operand.vmem [shape: f32[1,128], index: 3, kind: input, shape index: {}]   ;;  %s150_s4 = inlined_call_operand.vmem [shape: bf16[8,128], index: 4, kind: output, shape index: {}]  }
   0x1   :  { %96 = vmatprep.subr.bf16.mxu0 %v104_v0  ;;  %v19_v1 = vld [vmem:[%s146_s1] sm:$0xf]  ;;  %98 = vmatprep.mubr.msk.bf16.mxu0 %vm105_vm1, %v104_v0 }
   0x2   :  { %v33_v2 = vsel %vm31_vm0, %v19_v1, 0  ;;  %v18_v3 = vld [vmem:[%s147_s0] sm:$0xf] }
   0x3   :  { %97 = vmatpush3.bf16.msra.mxu0 %v33_v2  ;;  %v91_v4 = vld [vmem:[%s148_s2] ss:$0 sm:$0xff] }
   0x4   :  { %v93_v6 = vld [vmem:[%s149_s3] ss:$0 sm:$0xff] }
   0x6   :  { %99 = vmatmul.mubr.msk.bf16.vlgmr.msra.gmra.mxu0 %vm27_vm2, %v18_v3 }
  0xc6   :  { %v69_v5 = vpop.f32.mrf.mxu0 }
  0xc7   :  { %v70_v7 = vadd.f32 %v91_v4, %v69_v5 }
  0xc8   :  { %v100_v8 = vpop.f32.mrf.mxu0 }
  0xc9   :  { %vm75_vm3 = vcmp.gt.f32.partialorder %v70_v7, 0.0  ;;  %v83_v9 = vmul.f32 %v93_v6, %v70_v7 }
  0xca   :  { %v72_v10 = vpop.f32.mrf.mxu0 }
  0xcb   :  { %v84_v11 = vsel %vm75_vm3, %v70_v7, %v83_v9 }
  0xcc   :  { %v85_v12 = vpack.c.bf16 %v84_v11, %v84_v11  ;;  %v101_v13 = vpop.f32.mrf.mxu0 }
  0xce   :  { %86 = vst [vmem:[%s150_s4] sm:$0xf] %v85_v12 }

// kernel: _lambda_.15
= control target key start
LH: loop header
LB: loop body
LE: loop exit
PB: predicated region body
PF: predicated region fallthrough
CT: control target
= control target key end

     0   :  { %v181_v0 = vmov 0.0   ;;  %vm182_vm0 = vmmov 0   ;;  %s236_s1 = inlined_call_operand.vmem [shape: bf16[128,128], index: 1, kind: input, shape index: {}]   ;;  %s237_s0 = inlined_call_operand.vmem [shape: bf16[8,128], index: 0, kind: input, shape index: {}]   ;;  %s238_s2 = inlined_call_operand.vmem [shape: f32[1,128], index: 2, kind: input, shape index: {}]   ;;  %s239_s3 = inlined_call_operand.vmem [shape: bf16[8,128], index: 3, kind: output, shape index: {}]  }
   0x1   :  { %151 = vmatprep.subr.bf16.mxu0 %v181_v0  ;;  %v173_v1 = vld [vmem:[%s236_s1 + $0x38] sm:$0xff]   ;;  %167 = vmatprep.mubr.msk.bf16.mxu0 %vm182_vm0, %v181_v0  ;;  %v174_v2 = vld [vmem:[%s236_s1 + $0x30] sm:$0xff]   ;;  %v175_v3 = vld [vmem:[%s236_s1 + $0x28] sm:$0xff]  }
   0x2   :  { %152 = vmatpush3.bf16.msra.mxu0 %v173_v1  ;;  %v176_v4 = vld [vmem:[%s236_s1 + $0x20] sm:$0xff]   ;;  %v177_v5 = vld [vmem:[%s236_s1 + $0x18] sm:$0xff]   ;;  %v178_v6 = vld [vmem:[%s236_s1 + $0x10] sm:$0xff]  }
   0x3   :  { %153 = vmatprep.subr.bf16.mxu0 %v181_v0  ;;  %v179_v7 = vld [vmem:[%s236_s1 + $0x8] sm:$0xff]   ;;  %v180_v8 = vld [vmem:[%s236_s1] sm:$0xff]  }
   0x4   :  { %v15_v9 = vld [vmem:[%s237_s0] sm:$0xf] }
   0x5   :  { %v133_v10 = vld [vmem:[%s238_s2] ss:$0 sm:$0xff] }
   0x6   :  { %154 = vmatpush3.bf16.msra.mxu0 %v174_v2 }
   0x7   :  { %155 = vmatprep.subr.bf16.mxu0 %v181_v0 }
   0xa   :  { %156 = vmatpush3.bf16.msra.mxu0 %v175_v3 }
   0xb   :  { %157 = vmatprep.subr.bf16.mxu0 %v181_v0 }
   0xe   :  { %158 = vmatpush3.bf16.msra.mxu0 %v176_v4 }
   0xf   :  { %159 = vmatprep.subr.bf16.mxu0 %v181_v0 }
  0x12   :  { %160 = vmatpush3.bf16.msra.mxu0 %v177_v5 }
  0x13   :  { %161 = vmatprep.subr.bf16.mxu0 %v181_v0 }
  0x16   :  { %162 = vmatpush3.bf16.msra.mxu0 %v178_v6 }
  0x17   :  { %163 = vmatprep.subr.bf16.mxu0 %v181_v0 }
  0x1a   :  { %164 = vmatpush3.bf16.msra.mxu0 %v179_v7 }
  0x1b   :  { %165 = vmatprep.subr.bf16.mxu0 %v181_v0 }
  0x1e   :  { %166 = vmatpush3.bf16.msra.mxu0 %v180_v8 }
  0x21   :  { %168 = vmatmul.mubr.bf16.vlgmr.msra.gmra.mxu0 %v15_v9 }
  0xe1   :  { %v121_v11 = vpop.f32.mrf.mxu0 }
  0xe2   :  { %v122_v12 = vadd.f32 %v133_v10, %v121_v11 }
  0xe3   :  { %v169_v13 = vpop.f32.mrf.mxu0 }
  0xe4   :  { %v127_v14 = vpack.c.bf16 %v122_v12, %v122_v12 }
  0xe5   :  { %v124_v15 = vpop.f32.mrf.mxu0 }
  0xe6   :  { %128 = vst [vmem:[%s239_s3] sm:$0xf] %v127_v14 }
  0xe7   :  { %v170_v16 = vpop.f32.mrf.mxu0 }

// kernel: _lambda_.14
= control target key start
LH: loop header
LB: loop body
LE: loop exit
PB: predicated region body
PF: predicated region fallthrough
CT: control target
= control target key end

     0   :  { %8 = vsyncpa [#allocation3], 0  ;;  %s221_s12 = smov [#allocation2]   ;;  %s258_s0 = inlined_call_operand.vmem [shape: bf16[8,128], index: 0, kind: input, shape index: {}]   ;;  %s259_s1 = inlined_call_operand.hbm [shape: bf16[128,128], index: 1, kind: input, shape index: {}]   ;;  %s260_s2 = inlined_call_operand.vmem [shape: f32[1,128], index: 2, kind: input, shape index: {}]   ;;  %s261_s3 = inlined_call_operand.vmem [shape: bf16[8,128], index: 3, kind: output, shape index: {}]  }
   0x1   :  { %s16_s13 = sshll.u32 %s221_s12, 4  ;;  %s17_s13 = int_to_ptr.vmem [resolvable:$true] %s16_s13 }
   0x2   :  { %s207_s14 = scalar_lea.vmem %s17_s13, 1024  ;;  %p212_p1 = scmp.lt.s32.totalorder %s17_s13, %s17_s13 }
   0x3   :  { %p208_p0 = scmp.ne.s32.totalorder %s17_s13, %s207_s14  ;;  %p213_p2 = scmp.lt.s32.totalorder %s207_s14, %s207_s14 }
   0x5   :  { %p214_p3 = por %p213_p2, %p212_p1 }
   0x7   :  { %p215_p4 = pnand %p214_p3, %p208_p0 }
   0x9   :  { %218 = shalt.err (!%p215_p4)
}
   0xa   :  { %s222_s15 = smov 64   ;;  %s223_s16 = smov 4  }
   0xb   :  { %22 = dma.hbm_to_vmem [thread:$0]  %s259_s1, 1024, %s17_s13, [#allocation3], %s222_s15, %s222_s15, %s223_s16  }
   0xc   :  { %219 = dma.done.wait [#allocation3], 1024  }
   0xd   :  { %220 = vsyncadd [#allocation3], 4294966272  ;;  %v224_v0 = vmov 0.0   ;;  %vm225_vm0 = vmmov 0   ;;  %v191_v1 = vld [vmem:[#allocation2 + $0x38] sm:$0xff]   ;;  %v192_v2 = vld [vmem:[#allocation2 + $0x30] sm:$0xff]  }
   0xe   :  { %166 = vmatprep.subr.bf16.mxu0 %v224_v0  ;;  %182 = vmatprep.mubr.msk.bf16.mxu0 %vm225_vm0, %v224_v0  ;;  %v193_v3 = vld [vmem:[#allocation2 + $0x28] sm:$0xff]   ;;  %v194_v4 = vld [vmem:[#allocation2 + $0x20] sm:$0xff]   ;;  %v195_v5 = vld [vmem:[#allocation2 + $0x18] sm:$0xff]  }
   0xf   :  { %167 = vmatpush3.bf16.msra.mxu0 %v191_v1  ;;  %v196_v6 = vld [vmem:[#allocation2 + $0x10] sm:$0xff]   ;;  %v197_v7 = vld [vmem:[#allocation2 + $0x8] sm:$0xff]   ;;  %v198_v8 = vld [vmem:[#allocation2] sm:$0xff]  }
  0x10   :  { %168 = vmatprep.subr.bf16.mxu0 %v224_v0  ;;  %v29_v9 = vld [vmem:[%s258_s0] sm:$0xf] }
  0x11   :  { %v148_v10 = vld [vmem:[%s260_s2] ss:$0 sm:$0xff] }
  0x13   :  { %169 = vmatpush3.bf16.msra.mxu0 %v192_v2 }
  0x14   :  { %170 = vmatprep.subr.bf16.mxu0 %v224_v0 }
  0x17   :  { %171 = vmatpush3.bf16.msra.mxu0 %v193_v3 }
  0x18   :  { %172 = vmatprep.subr.bf16.mxu0 %v224_v0 }
  0x1b   :  { %173 = vmatpush3.bf16.msra.mxu0 %v194_v4 }
  0x1c   :  { %174 = vmatprep.subr.bf16.mxu0 %v224_v0 }
  0x1f   :  { %175 = vmatpush3.bf16.msra.mxu0 %v195_v5 }
  0x20   :  { %176 = vmatprep.subr.bf16.mxu0 %v224_v0 }
  0x23   :  { %177 = vmatpush3.bf16.msra.mxu0 %v196_v6 }
  0x24   :  { %178 = vmatprep.subr.bf16.mxu0 %v224_v0 }
  0x27   :  { %179 = vmatpush3.bf16.msra.mxu0 %v197_v7 }
  0x28   :  { %180 = vmatprep.subr.bf16.mxu0 %v224_v0 }
  0x2b   :  { %181 = vmatpush3.bf16.msra.mxu0 %v198_v8 }
  0x2e   :  { %183 = vmatmul.mubr.bf16.vlgmr.msra.gmra.mxu0 %v29_v9 }
  0xee   :  { %v135_v11 = vpop.f32.mrf.mxu0 }
  0xef   :  { %v136_v12 = vadd.f32 %v148_v10, %v135_v11 }
  0xf0   :  { %v184_v13 = vpop.f32.mrf.mxu0 }
  0xf1   :  { %v141_v14 = vpack.c.bf16 %v136_v12, %v136_v12 }
  0xf2   :  { %v138_v15 = vpop.f32.mrf.mxu0 }
  0xf3   :  { %142 = vst [vmem:[%s261_s3] sm:$0xf] %v141_v14 }
  0xf4   :  { %v185_v16 = vpop.f32.mrf.mxu0 }
  0xf5   :  { %147 = vsyncpa [#allocation3], 1 }

// kernel: _lambda_.16
= control target key start
LH: loop header
LB: loop body
LE: loop exit
PB: predicated region body
PF: predicated region fallthrough
CT: control target
= control target key end

     0   :  { %v198_v0 = vmov 0.0   ;;  %vm199_vm0 = vmmov 0   ;;  %v121_v10 = vlaneseq  ;;  %vm125_vm2 = vcmask 64512   ;;  %s253_s1 = inlined_call_operand.vmem [shape: bf16[128,8], index: 1, kind: input, shape index: {}]   ;;  %s254_s0 = inlined_call_operand.vmem [shape: bf16[8,128], index: 0, kind: input, shape index: {}]   ;;  %s255_s2 = inlined_call_operand.vmem [shape: bf16[8,8], index: 2, kind: input, shape index: {}]   ;;  %s256_s3 = inlined_call_operand.vmem [shape: bf16[8,8], index: 3, kind: output, shape index: {}]  }
   0x1   :  { %164 = vmatprep.subr.bf16.mxu0 %v198_v0  ;;  %v186_v1 = vld [vmem:[%s253_s1 + $0x38] sm:$0xff]   ;;  %180 = vmatprep.mubr.msk.bf16.mxu0 %vm199_vm0, %v198_v0  ;;  %v187_v2 = vld [vmem:[%s253_s1 + $0x30] sm:$0xff]   ;;  %v188_v3 = vld [vmem:[%s253_s1 + $0x28] sm:$0xff]   ;;  %vm141_vm3 = vcmask 60416  }
   0x2   :  { %165 = vmatpush3.bf16.msra.mxu0 %v186_v1  ;;  %v189_v4 = vld [vmem:[%s253_s1 + $0x20] sm:$0xff]   ;;  %v190_v5 = vld [vmem:[%s253_s1 + $0x18] sm:$0xff]   ;;  %v191_v6 = vld [vmem:[%s253_s1 + $0x10] sm:$0xff]   ;;  %v122_v11 = vand.u32 127, %v121_v10 }
   0x3   :  { %166 = vmatprep.subr.bf16.mxu0 %v198_v0  ;;  %v192_v7 = vld [vmem:[%s253_s1 + $0x8] sm:$0xff]   ;;  %v193_v8 = vld [vmem:[%s253_s1] sm:$0xff]  }
   0x4   :  { %v15_v9 = vld [vmem:[%s254_s0] sm:$0xf]  ;;  %vm123_vm1 = vcmp.lt.s32.totalorder %v122_v11, 8 }
   0x5   :  { %v137_v25 = vld [vmem:[%s255_s2] sm:$0xf] }
   0x6   :  { %167 = vmatpush3.bf16.msra.mxu0 %v187_v2  ;;  %v138_v26 = vunpack.c.l.bf16 %v137_v25 }
   0x7   :  { %168 = vmatprep.subr.bf16.mxu0 %v198_v0 }
   0xa   :  { %169 = vmatpush3.bf16.msra.mxu0 %v188_v3 }
   0xb   :  { %170 = vmatprep.subr.bf16.mxu0 %v198_v0 }
   0xe   :  { %171 = vmatpush3.bf16.msra.mxu0 %v189_v4 }
   0xf   :  { %172 = vmatprep.subr.bf16.mxu0 %v198_v0 }
  0x12   :  { %173 = vmatpush3.bf16.msra.mxu0 %v190_v5 }
  0x13   :  { %174 = vmatprep.subr.bf16.mxu0 %v198_v0 }
  0x16   :  { %175 = vmatpush3.bf16.msra.mxu0 %v191_v6 }
  0x17   :  { %176 = vmatprep.subr.bf16.mxu0 %v198_v0 }
  0x1a   :  { %177 = vmatpush3.bf16.msra.mxu0 %v192_v7 }
  0x1b   :  { %178 = vmatprep.subr.bf16.mxu0 %v198_v0 }
  0x1e   :  { %179 = vmatpush3.bf16.msra.mxu0 %v193_v8 }
  0x21   :  { %181 = vmatmul.mubr.bf16.vlgmr.msra.gmra.mxu0 %v15_v9 }
  0xe1   :  { %v114_v12 = vpop.f32.mrf.mxu0 }
  0xe2   :  { %v120_v13 = vmul.f32 0.25, %v114_v12 }
  0xe3   :  { %v182_v14 = vpop.f32.mrf.mxu0 }
  0xe4   :  { %v124_v15 = vsel %vm123_vm1, %v120_v13, -inf }
  0xe5   :  { %v117_v16 = vpop.f32.mrf.mxu0  ;;  %v126_v17 = vsel %vm125_vm2, %v124_v15, -inf }
  0xe6   :  { %127 = vmax.xlane.f32.xlu0 %v126_v17 }
  0xe7   :  { %v183_v18 = vpop.f32.mrf.mxu0 }
 0x16f   :  { %v128_v19 = vpop.xlane.xlu0 %127 }
 0x170   :  { %v129_v20 = vsub.f32 %v124_v15, %v128_v19 }
 0x172   :  { %v130_v21 = vmul.f32 1.442695, %v129_v20 }
 0x174   :  { %194 = vpow2.f32 %v130_v21 }
 0x181   :  { %v195_v22 = vpop.eup %194 }
 0x182   :  { %v132_v23 = vsel %vm125_vm2, %v195_v22, 0.0 }
 0x183   :  { %133 = vadd.xlane.f32.xlu0 %v132_v23 }
 0x20c   :  { %v134_v24 = vpop.xlane.xlu0 %133 }
 0x20d   :  { %196 = vrcp.f32 %v134_v24 }
 0x21a   :  { %v197_v27 = vpop.eup %196 }
 0x21b   :  { %v136_v28 = vmul.f32 %v197_v27, %v195_v22 }
 0x21d   :  { %v139_v29 = vmul.f32 %v138_v26, %v136_v28 }
 0x21f   :  { %v140_v30 = vpack.c.bf16 %v139_v29, %v139_v29 }
 0x221   :  { %142 = vst.msk [vmem:[%s256_s3] sm:$0xf] %vm141_vm3, %v140_v30 }

// kernel: _lambda_.23
= control target key start
LH: loop header
LB: loop body
LE: loop exit
PB: predicated region body
PF: predicated region fallthrough
CT: control target
= control target key end

     0   :  { %v180_v0 = vmov 0.0   ;;  %vm181_vm0 = vmmov 0   ;;  %s235_s1 = inlined_call_operand.vmem [shape: bf16[128,128], index: 1, kind: input, shape index: {}]   ;;  %s236_s0 = inlined_call_operand.vmem [shape: bf16[8,128], index: 0, kind: input, shape index: {}]   ;;  %s237_s2 = inlined_call_operand.vmem [shape: f32[1,128], index: 2, kind: input, shape index: {}]   ;;  %s238_s3 = inlined_call_operand.vmem [shape: f32[8,128], index: 3, kind: output, shape index: {}]  }
   0x1   :  { %150 = vmatprep.subr.bf16.mxu0 %v180_v0  ;;  %v172_v1 = vld [vmem:[%s235_s1 + $0x38] sm:$0xff]   ;;  %166 = vmatprep.mubr.msk.bf16.mxu0 %vm181_vm0, %v180_v0  ;;  %v173_v2 = vld [vmem:[%s235_s1 + $0x30] sm:$0xff]   ;;  %v174_v3 = vld [vmem:[%s235_s1 + $0x28] sm:$0xff]  }
   0x2   :  { %151 = vmatpush3.bf16.msra.mxu0 %v172_v1  ;;  %v175_v4 = vld [vmem:[%s235_s1 + $0x20] sm:$0xff]   ;;  %v176_v5 = vld [vmem:[%s235_s1 + $0x18] sm:$0xff]   ;;  %v177_v6 = vld [vmem:[%s235_s1 + $0x10] sm:$0xff]  }
   0x3   :  { %152 = vmatprep.subr.bf16.mxu0 %v180_v0  ;;  %v178_v7 = vld [vmem:[%s235_s1 + $0x8] sm:$0xff]   ;;  %v179_v8 = vld [vmem:[%s235_s1] sm:$0xff]  }
   0x4   :  { %v15_v9 = vld [vmem:[%s236_s0] sm:$0xf] }
   0x5   :  { %v132_v10 = vld [vmem:[%s237_s2] ss:$0 sm:$0xff] }
   0x6   :  { %153 = vmatpush3.bf16.msra.mxu0 %v173_v2 }
   0x7   :  { %154 = vmatprep.subr.bf16.mxu0 %v180_v0 }
   0xa   :  { %155 = vmatpush3.bf16.msra.mxu0 %v174_v3 }
   0xb   :  { %156 = vmatprep.subr.bf16.mxu0 %v180_v0 }
   0xe   :  { %157 = vmatpush3.bf16.msra.mxu0 %v175_v4 }
   0xf   :  { %158 = vmatprep.subr.bf16.mxu0 %v180_v0 }
  0x12   :  { %159 = vmatpush3.bf16.msra.mxu0 %v176_v5 }
  0x13   :  { %160 = vmatprep.subr.bf16.mxu0 %v180_v0 }
  0x16   :  { %161 = vmatpush3.bf16.msra.mxu0 %v177_v6 }
  0x17   :  { %162 = vmatprep.subr.bf16.mxu0 %v180_v0 }
  0x1a   :  { %163 = vmatpush3.bf16.msra.mxu0 %v178_v7 }
  0x1b   :  { %164 = vmatprep.subr.bf16.mxu0 %v180_v0 }
  0x1e   :  { %165 = vmatpush3.bf16.msra.mxu0 %v179_v8 }
  0x21   :  { %167 = vmatmul.mubr.bf16.vlgmr.msra.gmra.mxu0 %v15_v9 }
  0xe1   :  { %v121_v11 = vpop.f32.mrf.mxu0 }
  0xe2   :  { %v122_v12 = vadd.f32 %v132_v10, %v121_v11 }
  0xe3   :  { %v168_v13 = vpop.f32.mrf.mxu0 }
  0xe4   :  { %127 = vst [vmem:[%s238_s3] sm:$0xff] %v122_v12 }
  0xe5   :  { %v124_v14 = vpop.f32.mrf.mxu0 }
  0xe7   :  { %v169_v15 = vpop.f32.mrf.mxu0 }

// kernel: _lambda_.26
= control target key start
LH: loop header
LB: loop body
LE: loop exit
PB: predicated region body
PF: predicated region fallthrough
CT: control target
= control target key end

     0   :  { %vm31_vm0 = vcmask 1043456   ;;  %v103_v0 = vmov 0.0   ;;  %vm104_vm1 = vmmov 0   ;;  %vm27_vm2 = vcmask 64512   ;;  %s145_s1 = inlined_call_operand.vmem [shape: bf16[8,128], index: 1, kind: input, shape index: {}]   ;;  %s146_s0 = inlined_call_operand.vmem [shape: bf16[8,8], index: 0, kind: input, shape index: {}]   ;;  %s147_s2 = inlined_call_operand.vmem [shape: f32[1,128], index: 2, kind: input, shape index: {}]   ;;  %s148_s3 = inlined_call_operand.vmem [shape: f32[1,128], index: 3, kind: input, shape index: {}]   ;;  %s149_s4 = inlined_call_operand.vmem [shape: f32[8,128], index: 4, kind: output, shape index: {}]  }
   0x1   :  { %95 = vmatprep.subr.bf16.mxu0 %v103_v0  ;;  %v19_v1 = vld [vmem:[%s145_s1] sm:$0xf]  ;;  %97 = vmatprep.mubr.msk.bf16.mxu0 %vm104_vm1, %v103_v0 }
   0x2   :  { %v33_v2 = vsel %vm31_vm0, %v19_v1, 0  ;;  %v18_v3 = vld [vmem:[%s146_s0] sm:$0xf] }
   0x3   :  { %96 = vmatpush3.bf16.msra.mxu0 %v33_v2  ;;  %v90_v4 = vld [vmem:[%s147_s2] ss:$0 sm:$0xff] }
   0x4   :  { %v92_v6 = vld [vmem:[%s148_s3] ss:$0 sm:$0xff] }
   0x6   :  { %98 = vmatmul.mubr.msk.bf16.vlgmr.msra.gmra.mxu0 %vm27_vm2, %v18_v3 }
  0xc6   :  { %v69_v5 = vpop.f32.mrf.mxu0 }
  0xc7   :  { %v70_v7 = vadd.f32 %v90_v4, %v69_v5 }
  0xc8   :  { %v99_v8 = vpop.f32.mrf.mxu0 }
  0xc9   :  { %vm75_vm3 = vcmp.gt.f32.partialorder %v70_v7, 0.0  ;;  %v83_v9 = vmul.f32 %v92_v6, %v70_v7 }
  0xca   :  { %v72_v10 = vpop.f32.mrf.mxu0 }
  0xcb   :  { %v84_v11 = vsel %vm75_vm3, %v70_v7, %v83_v9 }
  0xcc   :  { %85 = vst [vmem:[%s149_s4] sm:$0xff] %v84_v11  ;;  %v100_v12 = vpop.f32.mrf.mxu0 }

// kernel: _lambda_.27
= control target key start
LH: loop header
LB: loop body
LE: loop exit
PB: predicated region body
PF: predicated region fallthrough
CT: control target
= control target key end

     0   :  { %v201_v0 = vmov 0.0   ;;  %vm202_vm0 = vmmov 0   ;;  %v125_v34 = vlaneseq  ;;  %s280_s1 = inlined_call_operand.vmem [shape: f32[128,128], index: 1, kind: input, shape index: {}]   ;;  %s281_s0 = inlined_call_operand.vmem [shape: f32[8,128], index: 0, kind: input, shape index: {}]   ;;  %s282_s2 = inlined_call_operand.vmem [shape: f32[1,128], index: 2, kind: input, shape index: {}]   ;;  %s283_s3 = inlined_call_operand.vmem [shape: f32[8,128], index: 3, kind: output, shape index: {}]  }
   0x1   :  { %156 = vmatprep.subr.mxu0 %v201_v0  ;;  %v30_v1 = vld [vmem:[%s280_s1 + $0x78] sm:$0xff]  ;;  %v29_v2 = vld [vmem:[%s280_s1 + $0x70] sm:$0xff]  ;;  %188 = vmatprep.mubr.msk.f32.mxu0 %vm202_vm0, %v201_v0  ;;  %v28_v3 = vld [vmem:[%s280_s1 + $0x68] sm:$0xff] }
   0x2   :  { %157 = vmatpush3.msra.mxu0 %v30_v1  ;;  %v27_v4 = vld [vmem:[%s280_s1 + $0x60] sm:$0xff]  ;;  %v26_v6 = vld [vmem:[%s280_s1 + $0x58] sm:$0xff]  ;;  %v25_v8 = vld [vmem:[%s280_s1 + $0x50] sm:$0xff]  ;;  %v126_v35 = vand.u32 127, %v125_v34 }
   0x3   :  { %158 = vmatprep.subr.mxu0 %v201_v0  ;;  %v14_v5 = vld [vmem:[%s281_s0] sm:$0xff]  ;;  %v24_v9 = vld [vmem:[%s280_s1 + $0x48] sm:$0xff]  ;;  %v22_v11 = vld [vmem:[%s280_s1 + $0x38] sm:$0xff] }
   0x4   :  { %159 = vmatpush3.msra.mxu0 %v29_v2  ;;  %v101_v7 = vmul.f32 %v14_v5, %v14_v5  ;;  %v23_v10 = vld [vmem:[%s280_s1 + $0x40] sm:$0xff]  ;;  %v21_v12 = vld [vmem:[%s280_s1 + $0x30] sm:$0xff]  ;;  %v20_v13 = vld [vmem:[%s280_s1 + $0x28] sm:$0xff]  ;;  %vm127_vm1 = vcmp.lt.s32.totalorder %v126_v35, 2 }
   0x5   :  { %160 = vmatprep.subr.mxu0 %v201_v0  ;;  %v19_v14 = vld [vmem:[%s280_s1 + $0x20] sm:$0xff]  ;;  %v18_v15 = vld [vmem:[%s280_s1 + $0x18] sm:$0xff]  ;;  %v17_v16 = vld [vmem:[%s280_s1 + $0x10] sm:$0xff] }
   0x6   :  { %161 = vmatpush3.msra.mxu0 %v28_v3  ;;  %102 = vadd.xlane.f32.xlu0 %v101_v7  ;;  %v16_v17 = vld [vmem:[%s280_s1 + $0x8] sm:$0xff]  ;;  %v15_v18 = vld [vmem:[%s280_s1] sm:$0xff] }
   0x7   :  { %162 = vmatprep.subr.mxu0 %v201_v0  ;;  %v138_v19 = vld [vmem:[%s282_s2] ss:$0 sm:$0xff] }
   0x8   :  { %163 = vmatpush3.msra.mxu0 %v27_v4 }
   0x9   :  { %164 = vmatprep.subr.mxu0 %v201_v0 }
   0xa   :  { %165 = vmatpush3.msra.mxu0 %v26_v6 }
   0xb   :  { %166 = vmatprep.subr.mxu0 %v201_v0 }
   0xc   :  { %167 = vmatpush3.msra.mxu0 %v25_v8 }
   0xd   :  { %168 = vmatprep.subr.mxu0 %v201_v0 }
   0xe   :  { %169 = vmatpush3.msra.mxu0 %v24_v9 }
   0xf   :  { %170 = vmatprep.subr.mxu0 %v201_v0 }
  0x10   :  { %171 = vmatpush3.msra.mxu0 %v23_v10 }
  0x11   :  { %172 = vmatprep.subr.mxu0 %v201_v0 }
  0x12   :  { %173 = vmatpush3.msra.mxu0 %v22_v11 }
  0x13   :  { %174 = vmatprep.subr.mxu0 %v201_v0 }
  0x14   :  { %175 = vmatpush3.msra.mxu0 %v21_v12 }
  0x15   :  { %176 = vmatprep.subr.mxu0 %v201_v0 }
  0x16   :  { %177 = vmatpush3.msra.mxu0 %v20_v13 }
  0x17   :  { %178 = vmatprep.subr.mxu0 %v201_v0 }
  0x18   :  { %179 = vmatpush3.msra.mxu0 %v19_v14 }
  0x19   :  { %180 = vmatprep.subr.mxu0 %v201_v0 }
  0x1a   :  { %181 = vmatpush3.msra.mxu0 %v18_v15 }
  0x1b   :  { %182 = vmatprep.subr.mxu0 %v201_v0 }
  0x1c   :  { %183 = vmatpush3.msra.mxu0 %v17_v16 }
  0x1d   :  { %184 = vmatprep.subr.mxu0 %v201_v0 }
  0x1e   :  { %185 = vmatpush3.msra.mxu0 %v16_v17 }
  0x1f   :  { %186 = vmatprep.subr.mxu0 %v201_v0 }
  0x20   :  { %187 = vmatpush3.msra.mxu0 %v15_v18 }
  0x21   :  { %189 = vmatmul.mubr.f32.vlgmr.msra.gmra.mxu0 %v14_v5 }
  0x8f   :  { %v103_v20 = vpop.xlane.xlu0 %102 }
  0x90   :  { %v111_v21 = vadd.f32 %v138_v19, %v103_v20 }
  0xe1   :  { %v97_v22 = vpop.f32.mrf.mxu0 }
  0xe2   :  { %v112_v23 = vmul.f32 2.0, %v97_v22 }
  0xe3   :  { %v190_v24 = vpop.f32.mrf.mxu0 }
  0xe4   :  { %v113_v25 = vsub.f32 %v111_v21, %v112_v23 }
  0xe6   :  { %v114_v26 = vmax.f32 %v113_v25, 0.0 }
  0xe8   :  { %v116_v27 = vmul.f32 10000.0, %v114_v26 }
  0xea   :  { %v117_v28 = vadd.f32 1.0, %v116_v27 }
  0xec   :  { %193 = vrcp.f32 %v117_v28 }
  0xf9   :  { %v194_v29 = vpop.eup %193 }
  0xfa   :  { %195 = vlog2.f32 %v194_v29 }
 0x107   :  { %v196_v30 = vpop.eup %195 }
 0x108   :  { %v121_v31 = vmul.f32 0.6931472, %v196_v30 }
 0x10a   :  { %v122_v32 = vmul.f32 0.50005, %v121_v31 }
 0x10c   :  { %v123_v33 = vmul.f32 1.442695, %v122_v32 }
 0x10e   :  { %197 = vpow2.f32 %v123_v33 }
 0x11b   :  { %v198_v36 = vpop.eup %197 }
 0x11c   :  { %v128_v37 = vsel %vm127_vm1, %v198_v36, 0.0 }
 0x11d   :  { %129 = vadd.xlane.f32.xlu0 %v128_v37 }
 0x1a6   :  { %v130_v38 = vpop.xlane.xlu0 %129 }
 0x1a7   :  { %199 = vrcp.f32 %v130_v38 }
 0x1b4   :  { %v200_v39 = vpop.eup %199 }
 0x1b5   :  { %v132_v40 = vmul.f32 %v200_v39, %v128_v37 }
 0x1b7   :  { %133 = vst [vmem:[%s283_s3] sm:$0xff] %v132_v40 }

</bundles_post_ra>
